<compile_context>
chip_gen: v7x
topology: tpu7x:2x2x1
jax: 0.10.0
libtpu: 0.0.40
codegen_flags: <defaults>
</compile_context>

<pallas_src>
import numpy as np
import jax
import jax.numpy as jnp
from jax.experimental import pallas as pl
from jax.experimental.pallas import tpu as pltpu


def _quantile_kernel(tau_ref,    # (1, tile_n)               per-tile quantiles
                     ipi_ref,    # (quantile_dim, 1)         resident: i*pi, i=1..qd
                     wqT_ref,    # (output_dim, quantile_dim) resident
                     bq_ref,     # (output_dim, 1)           resident
                     rep_ref,    # (output_dim, tile_n)      streamed: inp[g % B] per lane
                     wfT_ref,    # (act_n, output_dim)       resident
                     bf_ref,     # (act_n, 1)                resident
                     out_ref):   # (act_n, tile_n)           lane-dense output
    # cos((i*pi) * tau): (qd,1) x (1,tile_n) broadcast mul + EUP cos.
    emb = jnp.cos(ipi_ref[...] * tau_ref[...])                    # (qd, tile_n)

    # quantile_fc (transposed) + bias + ReLU (MXU, f32 accumulate).
    h = jnp.dot(wqT_ref[...], emb, preferred_element_type=jnp.float32)
    h = jnp.maximum(h + bq_ref[...], 0.0)                         # (out_dim, tile_n)

    # inp.repeat(num_quantiles, 1) arrives pre-laid-out and lane-dense.
    mixed = rep_ref[...] * h                                      # (out_dim, tile_n)

    # final fc (transposed) + bias; unmasked lane-dense store.
    out = jnp.dot(wfT_ref[...], mixed, preferred_element_type=jnp.float32)
    out_ref[...] = (out + bf_ref[...]).astype(out_ref.dtype)


def _choose_tile_n(n_pad, max_lanes=4096):
    """Largest multiple of 128 that divides n_pad and is <= max_lanes, while
    leaving >= 2 grid steps whenever n_pad >= 256 (so both v7x TensorCores get
    work on the 'parallel' axis).  Per-tile VMEM is tiny even at 4096 lanes, so
    the per-step ~600-cycle overhead is what we amortize."""
    best = 128
    for t in range(128, min(n_pad, max_lanes) + 1, 128):
        if n_pad % t != 0:
            continue
        if n_pad >= 256 and n_pad // t < 2:
            continue
        best = t
    return best


def quantile_layer_forward(inp, wqT, bq, wfT, bf, *, num_quantiles=32, key=None):
    """Forward pass of QuantileLayer.

    inp : (B, output_dim)               batch of features
    wqT : (output_dim, quantile_dim)    quantile_fc weight, pre-transposed
    bq  : (output_dim, 1)               quantile_fc bias (column)
    wfT : (act_n, output_dim)           final fc weight, pre-transposed
    bf  : (act_n, 1)                    final fc bias (column)
    Returns (quantile_values: (num_quantiles, B, act_n),
             quantiles:       (num_quantiles*B, 1))
    """
    if key is None:
        key = jax.random.PRNGKey(0)
    B, output_dim = inp.shape
    qd = wqT.shape[1]
    act_n = wfT.shape[0]
    N = num_quantiles * B
    N_pad = ((N + 127) // 128) * 128          # lane-dense, unmasked stores
    tile_n = _choose_tile_n(N_pad)
    grid = (N_pad // tile_n,)

    # tau ~ U[0, 1): sampled once (lane-dense); padding lanes are ignored.
    tau = jax.random.uniform(key, (1, N_pad), jnp.float32)

    # rep[:, g] = inp[g % B]  == inp.repeat(num_quantiles, 1), transposed.
    rep = jnp.tile(inp.T, (1, num_quantiles))
    if N_pad != N:
        rep = jnp.pad(rep, ((0, 0), (0, N_pad - N)))

    # Grid-invariant cosine-basis scale i*pi, i = 1..quantile_dim (constant).
    ipi = jnp.asarray((np.arange(1, qd + 1) * np.pi).reshape(qd, 1), jnp.float32)

    resident = lambda i: (0, 0)
    streamed = lambda i: (0, i)
    grid_spec = pltpu.PrefetchScalarGridSpec(
        num_scalar_prefetch=0,
        grid=grid,
        in_specs=[
            pl.BlockSpec((1, tile_n), streamed),            # tau
            pl.BlockSpec((qd, 1), resident),                # i*pi
            pl.BlockSpec((output_dim, qd), resident),       # wqT
            pl.BlockSpec((output_dim, 1), resident),        # bq
            pl.BlockSpec((output_dim, tile_n), streamed),   # rep (tiled inp)
            pl.BlockSpec((act_n, output_dim), resident),    # wfT
            pl.BlockSpec((act_n, 1), resident),             # bf
        ],
        out_specs=pl.BlockSpec((act_n, tile_n), streamed),
    )

    outT = pl.pallas_call(
        _quantile_kernel,
        grid_spec=grid_spec,
        out_shape=jax.ShapeDtypeStruct((act_n, N_pad), jnp.float32),
        compiler_params=pltpu.CompilerParams(
            dimension_semantics=("parallel",)),
    )(tau, ipi, wqT, bq, rep, wfT, bf)

    if N_pad != N:
        outT = outT[:, :N]
        tau = tau[:, :N]
    quantile_values = outT.T.reshape(num_quantiles, B, act_n)
    quantiles = tau.reshape(N, 1)
    return quantile_values, quantiles


def _reference_forward(inp, wqT, bq, wfT, bf, quantiles, num_quantiles):
    """Pure-JAX reference mirroring the (fixed) PyTorch forward."""
    B, output_dim = inp.shape
    qd = wqT.shape[1]
    act_n = wfT.shape[0]
    qdist = jnp.tile(quantiles, (1, qd))                          # (N, qd)
    qrange = jnp.arange(1, qd + 1, dtype=jnp.float32)
    qdist = jnp.cos(qrange * np.pi * qdist)
    qdist = jnp.maximum(qdist @ wqT.T + bq[:, 0], 0.0)            # (N, output_dim)
    rep_inp = jnp.tile(inp, (num_quantiles, 1))
    qdist = rep_inp * qdist
    qvals = qdist @ wfT.T + bf[:, 0]                              # (N, act_n)
    return qvals.reshape(num_quantiles, B, act_n)


if __name__ == "__main__":
    # Small, module-consistent shapes.
    B = 4               # len(inp)
    quantile_dim = 64   # cosine-embedding dimension
    output_dim = 32     # feature dim of inp (== quantile_fc output dim)
    act_n = 8           # final fc output dim
    num_quantiles = 32

    root = jax.random.PRNGKey(0)
    k_tau, k_inp, k_wq, k_bq, k_wf, k_bf = jax.random.split(root, 6)

    # PyTorch-style Linear init, stored directly in the pre-transposed /
    # column layouts the kernel consumes (no wrapper-side transposes).
    bound_q = 1.0 / np.sqrt(quantile_dim)
    wqT = jax.random.uniform(k_wq, (output_dim, quantile_dim), jnp.float32,
                             -bound_q, bound_q)
    bq = jax.random.uniform(k_bq, (output_dim, 1), jnp.float32, -bound_q, bound_q)
    bound_f = 1.0 / np.sqrt(output_dim)
    wfT = jax.random.uniform(k_wf, (act_n, output_dim), jnp.float32,
                             -bound_f, bound_f)
    bf = jax.random.uniform(k_bf, (act_n, 1), jnp.float32, -bound_f, bound_f)

    inp = jax.random.normal(k_inp, (B, output_dim), jnp.float32)

    quantile_values, quantiles = quantile_layer_forward(
        inp, wqT, bq, wfT, bf, num_quantiles=num_quantiles, key=k_tau)
    jax.block_until_ready(quantile_values)
    jax.block_until_ready(quantiles)

    assert quantile_values.shape == (num_quantiles, B, act_n)
    assert quantiles.shape == (num_quantiles * B, 1)
    assert bool(jnp.all((quantiles >= 0.0) & (quantiles < 1.0)))

    ref = _reference_forward(inp, wqT, bq, wfT, bf, quantiles, num_quantiles)
    np.testing.assert_allclose(np.asarray(quantile_values), np.asarray(ref),
                               rtol=1e-4, atol=1e-5)
    print("KERNEL_OK")
</pallas_src>

<mosaic_0001>
module attributes {stable_mosaic.version = 11 : i64} {
  func.func @_quantile_kernel(%arg0: i32, %arg1: memref<1x128xf32, #tpu.memory_space<vmem>>, %arg2: memref<64x1xf32, #tpu.memory_space<vmem>>, %arg3: memref<32x64xf32, #tpu.memory_space<vmem>>, %arg4: memref<32x1xf32, #tpu.memory_space<vmem>>, %arg5: memref<32x128xf32, #tpu.memory_space<vmem>>, %arg6: memref<8x32xf32, #tpu.memory_space<vmem>>, %arg7: memref<8x1xf32, #tpu.memory_space<vmem>>, %arg8: memref<8x128xf32, #tpu.memory_space<vmem>>) attributes {dimension_semantics = [#tpu.dimension_semantics<parallel>], iteration_bounds = array<i64: 1>, scalar_prefetch = 0 : i64, scratch_operands = 0 : i64, tpu.core_type = #tpu.core_type<tc>, window_params = [{transform_indices = @transform_0, window_bounds = array<i64: 1, 128>}, {pipeline_mode = #tpu.pipeline_mode<synchronous>, transform_indices = @transform_1, window_bounds = array<i64: 64, 1>}, {pipeline_mode = #tpu.pipeline_mode<synchronous>, transform_indices = @transform_2, window_bounds = array<i64: 32, 64>}, {pipeline_mode = #tpu.pipeline_mode<synchronous>, transform_indices = @transform_3, window_bounds = array<i64: 32, 1>}, {transform_indices = @transform_4, window_bounds = array<i64: 32, 128>}, {pipeline_mode = #tpu.pipeline_mode<synchronous>, transform_indices = @transform_5, window_bounds = array<i64: 8, 32>}, {pipeline_mode = #tpu.pipeline_mode<synchronous>, transform_indices = @transform_6, window_bounds = array<i64: 8, 1>}, {transform_indices = @transform_7, window_bounds = array<i64: 8, 128>}]} {
    %c0 = arith.constant 0 : index
    %c0_0 = arith.constant 0 : index
    %0 = vector.load %arg2[%c0, %c0_0] : memref<64x1xf32, #tpu.memory_space<vmem>>, vector<64x1xf32>
    %c0_1 = arith.constant 0 : index
    %c0_2 = arith.constant 0 : index
    %1 = vector.load %arg1[%c0_1, %c0_2] : memref<1x128xf32, #tpu.memory_space<vmem>>, vector<1x128xf32>
    %2 = vector.broadcast %0 : vector<64x1xf32> to vector<64x128xf32>
    %3 = vector.broadcast %1 : vector<1x128xf32> to vector<64x128xf32>
    %4 = arith.mulf %2, %3 : vector<64x128xf32>
    %5 = math.cos %4 : vector<64x128xf32>
    %c0_3 = arith.constant 0 : index
    %c0_4 = arith.constant 0 : index
    %6 = vector.load %arg3[%c0_3, %c0_4] : memref<32x64xf32, #tpu.memory_space<vmem>>, vector<32x64xf32>
    %cst = arith.constant dense<0.000000e+00> : vector<32x128xf32>
    %7 = tpu.matmul %6, %5, %cst {dimension_numbers = #tpu.dot_dimension_numbers<[1], [0], [0], [1], [0, 0, 1, 1], [], []>} : vector<32x64xf32>, vector<64x128xf32>, vector<32x128xf32> -> vector<32x128xf32>
    %c0_5 = arith.constant 0 : index
    %c0_6 = arith.constant 0 : index
    %8 = vector.load %arg4[%c0_5, %c0_6] : memref<32x1xf32, #tpu.memory_space<vmem>>, vector<32x1xf32>
    %9 = vector.broadcast %8 : vector<32x1xf32> to vector<32x128xf32>
    %10 = arith.addf %7, %9 : vector<32x128xf32>
    %cst_7 = arith.constant 0.000000e+00 : f32
    %11 = vector.broadcast %cst_7 : f32 to vector<32x128xf32>
    %12 = arith.maximumf %10, %11 : vector<32x128xf32>
    %c0_8 = arith.constant 0 : index
    %c0_9 = arith.constant 0 : index
    %13 = vector.load %arg5[%c0_8, %c0_9] : memref<32x128xf32, #tpu.memory_space<vmem>>, vector<32x128xf32>
    %14 = arith.mulf %13, %12 : vector<32x128xf32>
    %c0_10 = arith.constant 0 : index
    %c0_11 = arith.constant 0 : index
    %15 = vector.load %arg6[%c0_10, %c0_11] : memref<8x32xf32, #tpu.memory_space<vmem>>, vector<8x32xf32>
    %cst_12 = arith.constant dense<0.000000e+00> : vector<8x128xf32>
    %16 = tpu.matmul %15, %14, %cst_12 {dimension_numbers = #tpu.dot_dimension_numbers<[1], [0], [0], [1], [0, 0, 1, 1], [], []>} : vector<8x32xf32>, vector<32x128xf32>, vector<8x128xf32> -> vector<8x128xf32>
    %c0_13 = arith.constant 0 : index
    %c0_14 = arith.constant 0 : index
    %17 = vector.load %arg7[%c0_13, %c0_14] : memref<8x1xf32, #tpu.memory_space<vmem>>, vector<8x1xf32>
    %18 = vector.broadcast %17 : vector<8x1xf32> to vector<8x128xf32>
    %19 = arith.addf %16, %18 : vector<8x128xf32>
    %c0_15 = arith.constant 0 : index
    %c0_16 = arith.constant 0 : index
    %20 = vector.load %arg8[%c0_15, %c0_16] : memref<8x128xf32, #tpu.memory_space<vmem>>, vector<8x128xf32>
    tpu.vector_store %arg8[%c0_15, %c0_16], %19 {strides = array<i32>} : memref<8x128xf32, #tpu.memory_space<vmem>>, vector<8x128xf32>,
    return
  }
  func.func @transform_0(%arg0: i32) -> (i32, i32) {
    %c0_i32 = arith.constant 0 : i32
    %c0_i32_0 = arith.constant 0 : i32
    return %c0_i32, %arg0 : i32, i32
  }
  func.func @transform_1(%arg0: i32) -> (i32, i32) {
    %c0_i32 = arith.constant 0 : i32
    %c0_i32_0 = arith.constant 0 : i32
    %c0_i32_1 = arith.constant 0 : i32
    return %c0_i32, %c0_i32_0 : i32, i32
  }
  func.func @transform_2(%arg0: i32) -> (i32, i32) {
    %c0_i32 = arith.constant 0 : i32
    %c0_i32_0 = arith.constant 0 : i32
    %c0_i32_1 = arith.constant 0 : i32
    return %c0_i32, %c0_i32_0 : i32, i32
  }
  func.func @transform_3(%arg0: i32) -> (i32, i32) {
    %c0_i32 = arith.constant 0 : i32
    %c0_i32_0 = arith.constant 0 : i32
    %c0_i32_1 = arith.constant 0 : i32
    return %c0_i32, %c0_i32_0 : i32, i32
  }
  func.func @transform_4(%arg0: i32) -> (i32, i32) {
    %c0_i32 = arith.constant 0 : i32
    %c0_i32_0 = arith.constant 0 : i32
    return %c0_i32, %arg0 : i32, i32
  }
  func.func @transform_5(%arg0: i32) -> (i32, i32) {
    %c0_i32 = arith.constant 0 : i32
    %c0_i32_0 = arith.constant 0 : i32
    %c0_i32_1 = arith.constant 0 : i32
    return %c0_i32, %c0_i32_0 : i32, i32
  }
  func.func @transform_6(%arg0: i32) -> (i32, i32) {
    %c0_i32 = arith.constant 0 : i32
    %c0_i32_0 = arith.constant 0 : i32
    %c0_i32_1 = arith.constant 0 : i32
    return %c0_i32, %c0_i32_0 : i32, i32
  }
  func.func @transform_7(%arg0: i32) -> (i32, i32) {
    %c0_i32 = arith.constant 0 : i32
    %c0_i32_0 = arith.constant 0 : i32
    return %c0_i32, %arg0 : i32, i32
  }
}

</mosaic_0001>

<bundles_post_ra>
// kernel: tpu_custom_call.1
= control target key start
LH: loop header
LB: loop body
LE: loop exit
PB: predicated region body
PF: predicated region fallthrough
CT: control target
= control target key end

     0   :  { %v1359_v2 = vmov 0   ;;  %s2169_s0 = inlined_call_operand.vmem [shape: f32[1,128], index: 0, kind: input, shape index: {}]   ;;  %s2170_s1 = inlined_call_operand.vmem [shape: f32[64,1], index: 1, kind: input, shape index: {}]   ;;  %s2171_s2 = inlined_call_operand.vmem [shape: f32[32,64], index: 2, kind: input, shape index: {}]   ;;  %s2172_s3 = inlined_call_operand.vmem [shape: f32[32,1], index: 3, kind: input, shape index: {}]   ;;  %s2173_s4 = inlined_call_operand.vmem [shape: f32[32,128], index: 4, kind: input, shape index: {}]   ;;  %s2174_s5 = inlined_call_operand.vmem [shape: f32[8,32], index: 5, kind: input, shape index: {}]   ;;  %s2175_s6 = inlined_call_operand.vmem [shape: f32[8,1], index: 6, kind: input, shape index: {}]   ;;  %s2176_s7 = inlined_call_operand.hbm [shape: f32[8,128], index: 7, kind: output, shape index: {}]  }
   0x1   :  { %v29_v0 = vld [vmem:[%s2170_s1 + $0x10] sm:$0xff]  ;;  %v27_v1 = vld [vmem:[%s2170_s1] sm:$0xff]  ;;  %1302 = vset.pattern.permute.xlu1 %v1359_v2  ;;  %1301 = vset.pattern.permute.xlu0 %v1359_v2  ;;  %v30_v3 = vld [vmem:[%s2170_s1 + $0x18] sm:$0xff] }
   0x2   :  { %48 = vperm.xlu1 %1302, %v29_v0   ;;  %38 = vperm.xlu0 %1301, %v27_v1   ;;  %v28_v4 = vld [vmem:[%s2170_s1 + $0x8] sm:$0xff] }
   0x3   :  { %12 = vsyncpa [#allocation3], 0  ;;  %v32_v5 = vld [vmem:[%s2170_s1 + $0x28] sm:$0xff]  ;;  %v31_v6 = vld [vmem:[%s2170_s1 + $0x20] sm:$0xff]  ;;  %v1360_v54 = vmov 683565275  }
   0x4   :  { %v34_v7 = vld [vmem:[%s2170_s1 + $0x38] sm:$0xff]  ;;  %v33_v8 = vld [vmem:[%s2170_s1 + $0x30] sm:$0xff]  ;;  %v919_v9 = vld [vmem:[%s2172_s3 + $0x8] sm:$0xff]  ;;  %v1361_v56 = vmov 2475754826   ;;  %s1369_s19 = smov [#allocation2]  }
   0x5   :  { %v918_v10 = vld [vmem:[%s2172_s3] sm:$0xff]  ;;  %v921_v11 = vld [vmem:[%s2172_s3 + $0x18] sm:$0xff]  ;;  %v920_v12 = vld [vmem:[%s2172_s3 + $0x10] sm:$0xff]  ;;  %v1362_v58 = vmov 2131351028   ;;  %s1140_s20 = sshll.u32 %s1369_s19, 4  ;;  %s1141_s20 = int_to_ptr.vmem [resolvable:$true] %s1140_s20 }
   0x6   :  { %53 = vperm.xlu1 %1302, %v30_v3   ;;  %43 = vperm.xlu0 %1301, %v28_v4   ;;  %v1053_v13 = vld [vmem:[%s2175_s6] sm:$0xff]  ;;  %v1363_v60 = vmov 2102212464   ;;  %v1364_v62 = vmov 920167782   ;;  %p1340_p1 = scmp.lt.s32.totalorder %s1141_s20, %s1141_s20 }
   0x7   :  { %v1452_v14 = vld [vmem:[%s2169_s0] ss:$0 sm:$0xff] }
   0xa   :  { %63 = vperm.xlu1 %1302, %v32_v5   ;;  %58 = vperm.xlu0 %1301, %v31_v6   ;;  %v1365_v6 = vmov 1326507024  }
   0xe   :  { %73 = vperm.xlu1 %1302, %v34_v7   ;;  %68 = vperm.xlu0 %1301, %v33_v8  }
  0x12   :  { %929 = vperm.xlu1 %1302, %v919_v9   ;;  %924 = vperm.xlu0 %1301, %v918_v10  }
  0x16   :  { %939 = vperm.xlu1 %1302, %v921_v11   ;;  %934 = vperm.xlu0 %1301, %v920_v12  }
  0x1a   :  { %1056 = vperm.xlu0 %1301, %v1053_v13  }
  0x81   :  { %v49_v15 = vpop.permute.xlu1 %48  ;;  %v39_v16 = vpop.permute.xlu0 %38 }
  0x82   :  { %v1455_v17 = vmul.f32 %v1452_v14, %v49_v15  ;;  %v1458_v18 = vmul.f32 %v1452_v14, %v39_v16 }
  0x84   :  { %v296_v19 = vand.u32 2147483647, %v1455_v17  ;;  %v299_v20 = vand.u32 2139095040, %v1455_v17  ;;  %v90_v21 = vand.u32 2147483647, %v1458_v18  ;;  %v93_v22 = vand.u32 2139095040, %v1458_v18 }
  0x85   :  { %v54_v23 = vpop.permute.xlu1 %53  ;;  %v44_v24 = vpop.permute.xlu0 %43 }
  0x86   :  { %v300_v25 = vshrl.u32 %v299_v20, 23  ;;  %v303_v26 = vand.u32 8388607, %v296_v19  ;;  %v1467_v27 = vmul.f32 %v1452_v14, %v54_v23  ;;  %v94_v28 = vshrl.u32 %v93_v22, 23 }
  0x87   :  { %v97_v29 = vand.u32 8388607, %v90_v21  ;;  %v1473_v32 = vmul.f32 %v1452_v14, %v44_v24 }
  0x88   :  { %v1157_v30 = vadd.s32 4294967169, %v300_v25  ;;  %v399_v31 = vand.u32 2147483647, %v1467_v27  ;;  %v304_v33 = vor.u32 8388608, %v303_v26  ;;  %v1149_v34 = vadd.s32 4294967169, %v94_v28 }
  0x89   :  { %v402_v35 = vand.u32 2139095040, %v1467_v27  ;;  %v98_v37 = vor.u32 8388608, %v97_v29  ;;  %v2178_v41 = vand.u32 2147483647, %v1473_v32  ;;  %v196_v52 = vand.u32 2139095040, %v1473_v32 }
  0x8a   :  { %v306_v36 = vadd.s32 1, %v1157_v30  ;;  %v100_v38 = vadd.s32 1, %v1149_v34  ;;  %v1478_v40 = vand.u32 8388607, %v399_v31  ;;  %v1481_v43 = vshll.u32 %v304_v33, 8 }
  0x8b   :  { %v403_v39 = vshrl.u32 %v402_v35, 23  ;;  %v1483_v48 = vshll.u32 %v98_v37, 8 }
  0x8c   :  { %vm307_vm0 = vcmp.gt.s32.totalorder %v306_v36, 0  ;;  %vm101_vm1 = vcmp.gt.s32.totalorder %v100_v38, 0  ;;  %v407_v51 = vor.u32 8388608, %v1478_v40 }
  0x8d   :  { %v308_v42 = vsel %vm307_vm0, %v306_v36, 0  ;;  %v1161_v44 = vadd.s32 4294967169, %v403_v39  ;;  %v102_v47 = vsel %vm101_vm1, %v100_v38, 0 }
  0x8e   :  { %v309_v45 = vshrl.u32 %v308_v42, 5  ;;  %v310_v46 = vand.u32 31, %v308_v42  ;;  %v1485_v49 = vshrl.u32 %v102_v47, 5  ;;  %v104_v50 = vand.u32 31, %v102_v47 }
  0x8f   :  { %v1494_v0 = vadd.s32 1, %v1161_v44 }
  0x90   :  { %v311_v53 = vsub.s32 32, %v310_v46  ;;  %v313_v55 = vshll.u32 %v1360_v54, %v310_v46  ;;  %v316_v57 = vshll.u32 %v1361_v56, %v310_v46  ;;  %v319_v59 = vshll.u32 %v1362_v58, %v310_v46 }
  0x91   :  { %v322_v61 = vshll.u32 %v1363_v60, %v310_v46  ;;  %v325_v63 = vshll.u32 %v1364_v62, %v310_v46  ;;  %vm328_vm2 = vcmp.lt.s32.totalorder %v309_v45, 1  ;;  %vm329_vm3 = vcmp.lt.s32.totalorder %v309_v45, 2 }
  0x92   :  { %v312_v1 = vshrl.u32 %v1360_v54, %v311_v53  ;;  %v314_v2 = vshrl.u32 %v1361_v56, %v311_v53  ;;  %v317_v3 = vshrl.u32 %v1362_v58, %v311_v53  ;;  %v320_v4 = vshrl.u32 %v1363_v60, %v311_v53 }
  0x93   :  { %v323_v5 = vshrl.u32 %v1364_v62, %v311_v53  ;;  %v326_v7 = vshrl.u32 %v1365_v6, %v311_v53  ;;  %vm330_vm4 = vcmp.lt.s32.totalorder %v309_v45, 3  ;;  %v105_v11 = vsub.s32 32, %v104_v50 }
  0x94   :  { %v315_v8 = vor.u32 %v314_v2, %v313_v55  ;;  %v318_v9 = vor.u32 %v317_v3, %v316_v57  ;;  %v321_v10 = vor.u32 %v320_v4, %v319_v59  ;;  %vm331_vm5 = vcmp.lt.s32.totalorder %v309_v45, 4 }
  0x95   :  { %v324_v12 = vor.u32 %v323_v5, %v322_v61  ;;  %v327_v13 = vor.u32 %v326_v7, %v325_v63  ;;  %v107_v15 = vshll.u32 %v1360_v54, %v104_v50  ;;  %v110_v28 = vshll.u32 %v1361_v56, %v104_v50 }
  0x96   :  { %v332_v16 = vsel %vm328_vm2, %v312_v1, %v315_v8  ;;  %v333_v20 = vsel %vm331_vm5, %v321_v10, 2102212464  ;;  %v336_v22 = vsel %vm328_vm2, %v315_v8, %v318_v9  ;;  %v340_v23 = vsel %vm328_vm2, %v318_v9, %v321_v10 }
  0x97   :  { %v334_v24 = vsel %vm330_vm4, %v318_v9, %v333_v20  ;;  %v337_v25 = vsel %vm331_vm5, %v324_v12, 920167782  ;;  %v341_v26 = vsel %vm331_vm5, %v327_v13, 1326507024  ;;  %v106_v33 = vshrl.u32 %v1360_v54, %v105_v11 }
  0x98   :  { %v338_v29 = vsel %vm330_vm4, %v321_v10, %v337_v25  ;;  %v342_v30 = vsel %vm330_vm4, %v324_v12, %v341_v26  ;;  %v108_v34 = vshrl.u32 %v1361_v56, %v105_v11  ;;  %v335_v35 = vsel %vm329_vm3, %v332_v16, %v334_v24 }
  0x99   :  { %v339_v36 = vsel %vm329_vm3, %v336_v22, %v338_v29  ;;  %v343_v37 = vsel %vm329_vm3, %v340_v23, %v342_v30  ;;  %v111_v38 = vshrl.u32 %v1362_v58, %v105_v11  ;;  %v113_v55 = vshll.u32 %v1362_v58, %v104_v50 }
  0x9a   :  { %v1517_v39 = vmul.u32.u64.low %v1481_v43, %v343_v37  ;;  %v1518_v42 = vmul.u32.u64.high %v1481_v43, %v343_v37, %v1517_v39  ;;  %v1521_v44 = vmul.u32.u64.low %v1481_v43, %v339_v36  ;;  %v1522_v46 = vmul.u32.u64.high %v1481_v43, %v339_v36, %v1521_v44 }
  0x9b   :  { %v109_v47 = vor.u32 %v108_v34, %v107_v15  ;;  %v112_v53 = vor.u32 %v111_v38, %v110_v28  ;;  %v114_v57 = vshrl.u32 %v1363_v60, %v105_v11  ;;  %v351_v45 = vmul.u32 %v1481_v43, %v335_v35  ;;  %v64_v28 = vpop.permute.xlu1 %63 }
  0x9c   :  { %v116_v59 = vshll.u32 %v1363_v60, %v104_v50  ;;  %v117_v61 = vshrl.u32 %v1364_v62, %v105_v11  ;;  %v120_v63 = vshrl.u32 %v1365_v6, %v105_v11  ;;  %v119_v2 = vshll.u32 %v1364_v62, %v104_v50 }
  0x9d   :  { %v115_v1 = vor.u32 %v114_v57, %v113_v55  ;;  %vm122_vm6 = vcmp.lt.s32.totalorder %v1485_v49, 1  ;;  %vm123_vm7 = vcmp.lt.s32.totalorder %v1485_v49, 2  ;;  %vm353_vm8 = vc.u32 %v1518_v42, %v1521_v44 }
  0x9e   :  { %v354_v3 = vadd.s32 1, %v1522_v46  ;;  %v118_v4 = vor.u32 %v117_v61, %v116_v59  ;;  %vm124_vm9 = vcmp.lt.s32.totalorder %v1485_v49, 3  ;;  %v121_v43 = vor.u32 %v120_v63, %v119_v2 }
  0x9f   :  { %vm125_vm10 = vcmp.lt.s32.totalorder %v1485_v49, 4  ;;  %v126_v5 = vsel %vm122_vm6, %v106_v33, %v109_v47  ;;  %v130_v7 = vsel %vm122_vm6, %v109_v47, %v112_v53  ;;  %v134_v10 = vsel %vm122_vm6, %v112_v53, %v115_v1 }
  0xa0   :  { %v355_v8 = vsel %vm353_vm8, %v354_v3, %v1522_v46  ;;  %v127_v50 = vsel %vm125_vm10, %v115_v1, 2102212464  ;;  %v131_v9 = vsel %vm125_vm10, %v118_v4, 920167782  ;;  %v135_v15 = vsel %vm125_vm10, %v121_v43, 1326507024 }
  0xa1   :  { %v356_v11 = vadd.s32 %v355_v8, %v351_v45  ;;  %v128_v12 = vsel %vm124_vm9, %v112_v53, %v127_v50  ;;  %v132_v13 = vsel %vm124_vm9, %v115_v1, %v131_v9  ;;  %v136_v22 = vsel %vm124_vm9, %v118_v4, %v135_v15 }
  0xa2   :  { %v129_v16 = vsel %vm123_vm7, %v126_v5, %v128_v12  ;;  %v133_v20 = vsel %vm123_vm7, %v130_v7, %v132_v13  ;;  %vm410_vm11 = vcmp.gt.s32.totalorder %v1494_v0, 0  ;;  %v137_v24 = vsel %vm123_vm7, %v134_v10, %v136_v22 }
  0xa3   :  { %v357_v23 = vadd.s32 536870912, %v356_v11  ;;  %v1548_v25 = vmul.u32.u64.low %v1483_v48, %v133_v20  ;;  %v1549_v26 = vmul.u32.u64.high %v1483_v48, %v133_v20, %v1548_v25  ;;  %v411_v33 = vsel %vm410_vm11, %v1494_v0, 0 }
  0xa4   :  { %v1553_v29 = vmul.u32.u64.low %v1483_v48, %v137_v24  ;;  %v1554_v30 = vmul.u32.u64.high %v1483_v48, %v137_v24, %v1553_v29  ;;  %v197_v34 = vshrl.u32 %v196_v52, 23  ;;  %v413_v36 = vand.u32 31, %v411_v33 }
  0xa5   :  { %v1559_v35 = vshrl.u32 %v357_v23, 30  ;;  %v145_v49 = vmul.u32 %v1483_v48, %v129_v16  ;;  %v1564_v37 = vshll.u32 %v407_v51, 8  ;;  %v1568_v38 = vand.u32 8388607, %v2178_v41 }
  0xa6   :  { %v1571_v39 = vmul.f32 %v1452_v14, %v64_v28  ;;  %v148_v52 = vadd.s32 1, %v1549_v26  ;;  %v412_v46 = vshrl.u32 %v411_v33, 5  ;;  %v414_v47 = vsub.s32 32, %v413_v36 }
  0xa7   :  { %v359_v0 = vshll.u32 %v1559_v35, 30  ;;  %vm147_vm12 = vc.u32 %v1554_v30, %v1548_v25  ;;  %v416_v40 = vshll.u32 %v1360_v54, %v413_v36  ;;  %v419_v48 = vshll.u32 %v1361_v56, %v413_v36 }
  0xa8   :  { %v1153_v51 = vadd.s32 4294967169, %v197_v34  ;;  %v149_v55 = vsel %vm147_vm12, %v148_v52, %v1549_v26  ;;  %v417_v57 = vshrl.u32 %v1361_v56, %v414_v47  ;;  %v422_v45 = vshll.u32 %v1362_v58, %v413_v36 }
  0xa9   :  { %v1579_v53 = vsub.s32 %v356_v11, %v359_v0  ;;  %v150_v59 = vadd.s32 %v149_v55, %v145_v49  ;;  %v420_v61 = vshrl.u32 %v1362_v58, %v414_v47  ;;  %v423_v63 = vshrl.u32 %v1363_v60, %v414_v47 }
  0xaa   :  { %v425_v1 = vshll.u32 %v1363_v60, %v413_v36  ;;  %v418_v3 = vor.u32 %v417_v57, %v416_v40  ;;  %v426_v4 = vshrl.u32 %v1364_v62, %v414_v47  ;;  %v428_v43 = vshll.u32 %v1364_v62, %v413_v36 }
  0xab   :  { %v362_v2 = vsub.s32 0, %v1579_v53  ;;  %v151_v5 = vadd.s32 536870912, %v150_v59  ;;  %v421_v7 = vor.u32 %v420_v61, %v419_v48  ;;  %v424_v8 = vor.u32 %v423_v63, %v422_v45 }
  0xac   :  { %v429_v50 = vshrl.u32 %v1365_v6, %v414_v47  ;;  %v415_v10 = vshrl.u32 %v1360_v54, %v414_v47  ;;  %v427_v11 = vor.u32 %v426_v4, %v425_v1  ;;  %vm431_vm13 = vcmp.lt.s32.totalorder %v412_v46, 1 }
  0xad   :  { %v1158_v9 = vmin.u32 %v362_v2, %v1579_v53  ;;  %v1593_v12 = vshrl.u32 %v151_v5, 30  ;;  %vm433_vm14 = vcmp.lt.s32.totalorder %v412_v46, 3  ;;  %vm434_vm15 = vcmp.lt.s32.totalorder %v412_v46, 4 }
  0xae   :  { %v430_v13 = vor.u32 %v429_v50, %v428_v43  ;;  %v435_v16 = vsel %vm431_vm13, %v415_v10, %v418_v3  ;;  %v436_v20 = vsel %vm434_vm15, %v424_v8, 2102212464  ;;  %v439_v22 = vsel %vm431_vm13, %v418_v3, %v421_v7 }
  0xaf   :  { %v364_v15 = vclz %v1158_v9  ;;  %v153_v23 = vshll.u32 %v1593_v12, 30  ;;  %v437_v24 = vsel %vm433_vm14, %v421_v7, %v436_v20  ;;  %v440_v26 = vsel %vm434_vm15, %v427_v11, 920167782 }
  0xb0   :  { %v443_v28 = vsel %vm431_vm13, %v421_v7, %v424_v8  ;;  %vm432_vm0 = vcmp.lt.s32.totalorder %v412_v46, 2  ;;  %v441_v33 = vsel %vm433_vm14, %v424_v8, %v440_v26  ;;  %v444_v34 = vsel %vm434_vm15, %v430_v13, 1326507024 }
  0xb1   :  { %v1159_v29 = vadd.s32 4294967294, %v364_v15  ;;  %v1598_v36 = vsub.s32 %v150_v59, %v153_v23  ;;  %v438_v49 = vsel %vm432_vm0, %v435_v16, %v437_v24  ;;  %v442_v0 = vsel %vm432_vm0, %v439_v22, %v441_v33 }
  0xb2   :  { %v445_v52 = vsel %vm433_vm14, %v427_v11, %v444_v34  ;;  %v1602_v40 = vmul.u32.u64.low %v1564_v37, %v442_v0  ;;  %v1603_v48 = vmul.u32.u64.high %v1564_v37, %v442_v0, %v1602_v40  ;;  %v352_v59 = vadd.s32 %v1521_v44, %v1518_v42 }
  0xb3   :  { %vm1160_vm1 = vcmp.lt.s32.totalorder %v1159_v29, 0  ;;  %v446_v47 = vsel %vm432_vm0, %v443_v28, %v445_v52  ;;  %v156_v57 = vsub.s32 0, %v1598_v36  ;;  %v203_v1 = vadd.s32 1, %v1153_v51 }
  0xb4   :  { %v367_v55 = vsel %vm1160_vm1, 0, %v1159_v29  ;;  %v1608_v45 = vmul.u32.u64.low %v1564_v37, %v446_v47  ;;  %v1609_v61 = vmul.u32.u64.high %v1564_v37, %v446_v47, %v1608_v45  ;;  %v454_v3 = vmul.u32 %v1564_v37, %v438_v49 }
  0xb5   :  { %v368_v63 = vsub.s32 32, %v367_v55  ;;  %v372_v46 = vsub.s32 4294967266, %v367_v55  ;;  %v1150_v2 = vmin.u32 %v156_v57, %v1598_v36  ;;  %v201_v4 = vor.u32 8388608, %v1568_v38 }
  0xb6   :  { %v457_v7 = vadd.s32 1, %v1603_v48  ;;  %vm204_vm2 = vcmp.gt.s32.totalorder %v203_v1, 0  ;;  %v369_v8 = vshll.u32 %v1579_v53, %v367_v55  ;;  %vm456_vm3 = vc.u32 %v1609_v61, %v1602_v40 }
  0xb7   :  { %v370_v43 = vshrl.u32 %v352_v59, %v368_v63  ;;  %v373_v5 = vadd.s32 127, %v372_v46  ;;  %v158_v50 = vclz %v1150_v2  ;;  %v205_v42 = vsel %vm204_vm2, %v203_v1, 0 }
  0xb8   :  { %v458_v51 = vsel %vm456_vm3, %v457_v7, %v1603_v48  ;;  %v608_v9 = vand.u32 2139095040, %v1571_v39  ;;  %v207_v11 = vand.u32 31, %v205_v42  ;;  %v146_v15 = vadd.s32 %v1548_v25, %v1554_v30 }
  0xb9   :  { %v374_v44 = vshll.u32 %v373_v5, 23  ;;  %v371_v37 = vor.u32 %v370_v43, %v369_v8  ;;  %v1151_v10 = vadd.s32 4294967294, %v158_v50  ;;  %v459_v38 = vadd.s32 %v458_v51, %v454_v3 }
  0xba   :  { %v605_v53 = vand.u32 2147483647, %v1571_v39  ;;  %v208_v20 = vsub.s32 32, %v207_v11  ;;  %v1625_v22 = vshll.u32 %v201_v4, 8  ;;  %v206_v26 = vshrl.u32 %v205_v42, 5 }
  0xbb   :  { %v375_v13 = vor.u32 4788187, %v374_v44  ;;  %vm1152_vm4 = vcmp.lt.s32.totalorder %v1151_v10, 0  ;;  %v460_v16 = vadd.s32 536870912, %v459_v38  ;;  %v609_v28 = vshrl.u32 %v608_v9, 23 }
  0xbc   :  { %v161_v24 = vsel %vm1152_vm4, 0, %v1151_v10  ;;  %v378_v29 = vcvt.s32.f32 %v371_v37  ;;  %vm298_vm5 = vcmp.lt.s32.totalorder %v1455_v17, 0  ;;  %v210_v25 = vshll.u32 %v1360_v54, %v207_v11 }
  0xbd   :  { %v376_v23 = vand.u32 2147483647, %v375_v13  ;;  %v162_v33 = vsub.s32 32, %v161_v24  ;;  %v166_v34 = vsub.s32 4294967266, %v161_v24  ;;  %v1627_v49 = vshrl.u32 %v460_v16, 30 }
  0xbe   :  { %v211_v30 = vshrl.u32 %v1361_v56, %v208_v20  ;;  %v213_v0 = vshll.u32 %v1361_v56, %v207_v11  ;;  %v214_v52 = vshrl.u32 %v1362_v58, %v208_v20  ;;  %v217_v57 = vshrl.u32 %v1363_v60, %v208_v20 }
  0xbf   :  { %v379_v47 = vmul.f32 %v378_v29, %v376_v23  ;;  %v167_v48 = vadd.s32 127, %v166_v34  ;;  %v462_v55 = vshll.u32 %v1627_v49, 30  ;;  %v164_v45 = vshrl.u32 %v146_v15, %v162_v33 }
  0xc0   :  { %v212_v59 = vor.u32 %v211_v30, %v210_v25  ;;  %v216_v63 = vshll.u32 %v1362_v58, %v207_v11  ;;  %v1169_v46 = vadd.s32 4294967169, %v609_v28  ;;  %v215_v3 = vor.u32 %v214_v52, %v213_v0 }
  0xc1   :  { %v168_v1 = vshll.u32 %v167_v48, 23  ;;  %v1637_v2 = vsub.s32 %v459_v38, %v462_v55  ;;  %v219_v4 = vshll.u32 %v1363_v60, %v207_v11  ;;  %v220_v5 = vshrl.u32 %v1364_v62, %v208_v20 }
  0xc2   :  { %v218_v43 = vor.u32 %v217_v57, %v216_v63  ;;  %v222_v7 = vshll.u32 %v1364_v62, %v207_v11  ;;  %v223_v8 = vshrl.u32 %v1365_v6, %v208_v20  ;;  %v380_v50 = vxor.u32 2147483648, %v379_v47 }
  0xc3   :  { %v163_v42 = vshll.u32 %v1598_v36, %v161_v24  ;;  %v465_v44 = vsub.s32 0, %v1637_v2  ;;  %vm225_vm6 = vcmp.lt.s32.totalorder %v206_v26, 1  ;;  %v209_v51 = vshrl.u32 %v1360_v54, %v208_v20 }
  0xc4   :  { %v221_v9 = vor.u32 %v220_v5, %v219_v4  ;;  %v224_v37 = vor.u32 %v223_v8, %v222_v7  ;;  %vm226_vm7 = vcmp.lt.s32.totalorder %v206_v26, 2  ;;  %v169_v38 = vor.u32 4788187, %v168_v1 }
  0xc5   :  { %v165_v10 = vor.u32 %v164_v45, %v163_v42  ;;  %v1162_v13 = vmin.u32 %v465_v44, %v1637_v2  ;;  %vm228_vm8 = vcmp.lt.s32.totalorder %v206_v26, 4  ;;  %vm227_vm9 = vcmp.lt.s32.totalorder %v206_v26, 3 }
  0xc6   :  { %v230_v11 = vsel %vm228_vm8, %v218_v43, 2102212464  ;;  %v233_v15 = vsel %vm225_vm6, %v212_v59, %v215_v3  ;;  %v234_v16 = vsel %vm228_vm8, %v221_v9, 920167782  ;;  %v381_v36 = vsel %vm298_vm5, %v380_v50, %v379_v47 }
  0xc7   :  { %v467_v23 = vclz %v1162_v13  ;;  %v229_v24 = vsel %vm225_vm6, %v209_v51, %v212_v59  ;;  %v235_v20 = vsel %vm227_vm9, %v218_v43, %v234_v16  ;;  %v231_v28 = vsel %vm227_vm9, %v215_v3, %v230_v11 }
  0xc8   :  { %v236_v29 = vsel %vm226_vm7, %v233_v15, %v235_v20  ;;  %v237_v33 = vsel %vm225_vm6, %v215_v3, %v218_v43  ;;  %v238_v34 = vsel %vm228_vm8, %v224_v37, 1326507024  ;;  %v170_v25 = vand.u32 2147483647, %v169_v38  ;;  %v74_v37 = vpop.permute.xlu1 %73 }
  0xc9   :  { %v172_v30 = vcvt.s32.f32 %v165_v10  ;;  %v1163_v0 = vadd.s32 4294967294, %v467_v23  ;;  %v239_v52 = vsel %vm227_vm9, %v221_v9, %v238_v34  ;;  %v612_v47 = vand.u32 8388607, %v605_v53 }
  0xca   :  { %v240_v48 = vsel %vm226_vm7, %v237_v33, %v239_v52  ;;  %v1655_v55 = vmul.u32.u64.low %v1625_v22, %v236_v29  ;;  %v1656_v57 = vmul.u32.u64.high %v1625_v22, %v236_v29, %v1655_v55  ;;  %v232_v45 = vsel %vm226_vm7, %v229_v24, %v231_v28 }
  0xcb   :  { %vm1164_vm10 = vcmp.lt.s32.totalorder %v1163_v0, 0  ;;  %v1663_v59 = vmul.u32.u64.low %v1625_v22, %v240_v48  ;;  %v1664_v63 = vmul.u32.u64.high %v1625_v22, %v240_v48, %v1663_v59  ;;  %vm1668_vm11 = vcmp.le.f32.partialorder %v296_v19, 0.7853982 }
  0xcc   :  { %v455_v3 = vadd.s32 %v1602_v40, %v1609_v61  ;;  %v470_v4 = vsel %vm1164_vm10, 0, %v1163_v0  ;;  %v615_v43 = vadd.s32 1, %v1169_v46  ;;  %v1677_v26 = vsel %vm1668_vm11, %v1455_v17, %v381_v36  ;;  %v59_v46 = vpop.permute.xlu0 %58 }
  0xcd   :  { %v1679_v5 = vmul.f32 %v172_v30, %v170_v25  ;;  %v471_v7 = vsub.s32 32, %v470_v4  ;;  %v475_v8 = vsub.s32 4294967266, %v470_v4  ;;  %v248_v50 = vmul.u32 %v1625_v22, %v232_v45 }
  0xce   :  { %v251_v19 = vadd.s32 1, %v1656_v57  ;;  %v613_v42 = vor.u32 8388608, %v612_v47  ;;  %vm616_vm12 = vcmp.gt.s32.totalorder %v615_v43, 0  ;;  %v472_v44 = vshll.u32 %v1637_v2, %v470_v4 }
  0xcf   :  { %v473_v40 = vshrl.u32 %v455_v3, %v471_v7  ;;  %v476_v61 = vadd.s32 127, %v475_v8  ;;  %vm250_vm13 = vc.u32 %v1664_v63, %v1655_v55  ;;  %v617_v9 = vsel %vm616_vm12, %v615_v43, 0 }
  0xd0   :  { %v252_v51 = vsel %vm250_vm13, %v251_v19, %v1656_v57  ;;  %1303 = vcosq.f32 %v1677_v26  ;;  %v174_v22 = vxor.u32 2147483648, %v1679_v5  ;;  %v619_v11 = vand.u32 31, %v617_v9 }
  0xd1   :  { %v474_v10 = vor.u32 %v473_v40, %v472_v44  ;;  %v477_v38 = vshll.u32 %v476_v61, 23  ;;  %v253_v13 = vadd.s32 %v252_v51, %v248_v50  ;;  %v1690_v2 = vmul.f32 %v1452_v14, %v59_v46 }
  0xd2   :  { %v1692_v36 = vshll.u32 %v613_v42, 8  ;;  %v1695_v23 = vmul.f32 %v1452_v14, %v74_v37  ;;  %vm401_vm14 = vcmp.lt.s32.totalorder %v1467_v27, 0  ;;  %v618_v20 = vshrl.u32 %v617_v9, 5 }
  0xd3   :  { %v478_v15 = vor.u32 4788187, %v477_v38  ;;  %v254_v16 = vadd.s32 536870912, %v253_v13  ;;  %v481_v24 = vcvt.s32.f32 %v474_v10  ;;  %v620_v28 = vsub.s32 32, %v619_v11 }
  0xd4   :  { %v622_v29 = vshll.u32 %v1360_v54, %v619_v11  ;;  %v625_v25 = vshll.u32 %v1361_v56, %v619_v11  ;;  %v628_v30 = vshll.u32 %v1362_v58, %v619_v11  ;;  %v631_v57 = vshll.u32 %v1363_v60, %v619_v11 }
  0xd5   :  { %v479_v33 = vand.u32 2147483647, %v478_v15  ;;  %v1699_v34 = vshrl.u32 %v254_v16, 30  ;;  %v623_v0 = vshrl.u32 %v1361_v56, %v620_v28  ;;  %v626_v52 = vshrl.u32 %v1362_v58, %v620_v28 }
  0xd6   :  { %v629_v48 = vshrl.u32 %v1363_v60, %v620_v28  ;;  %vm1709_vm15 = vcmp.le.f32.partialorder %v399_v31, 0.7853982  ;;  %v632_v3 = vshrl.u32 %v1364_v62, %v620_v28  ;;  %v635_v4 = vshrl.u32 %v1365_v6, %v620_v28 }
  0xd7   :  { %v482_v45 = vmul.f32 %v481_v24, %v479_v33  ;;  %v256_v59 = vshll.u32 %v1699_v34, 30  ;;  %v624_v43 = vor.u32 %v623_v0, %v622_v29  ;;  %v627_v7 = vor.u32 %v626_v52, %v625_v25 }
  0xd8   :  { %v630_v8 = vor.u32 %v629_v48, %v628_v30  ;;  %v634_v50 = vshll.u32 %v1364_v62, %v619_v11  ;;  %vm92_vm0 = vcmp.lt.s32.totalorder %v1458_v18, 0  ;;  %v633_v31 = vor.u32 %v632_v3, %v631_v57 }
  0xd9   :  { %v483_v19 = vxor.u32 2147483648, %v482_v45  ;;  %v1718_v42 = vsub.s32 %v253_v13, %v256_v59  ;;  %vm637_vm1 = vcmp.lt.s32.totalorder %v618_v20, 1  ;;  %vm640_vm2 = vcmp.lt.s32.totalorder %v618_v20, 4 }
  0xda   :  { %v636_v44 = vor.u32 %v635_v4, %v634_v50  ;;  %v645_v40 = vsel %vm637_vm1, %v624_v43, %v627_v7  ;;  %v2179_v61 = vand.u32 2147483647, %v1690_v2  ;;  %vm639_vm3 = vcmp.lt.s32.totalorder %v618_v20, 3  ;;  %v1725_v37 = vpop.eup %1303 }
  0xdb   :  { %v259_v46 = vsub.s32 0, %v1718_v42  ;;  %v646_v51 = vsel %vm640_vm2, %v633_v31, 920167782  ;;  %v505_v9 = vand.u32 2139095040, %v1690_v2  ;;  %v621_v10 = vshrl.u32 %v1360_v54, %v620_v28 }
  0xdc   :  { %vm638_vm4 = vcmp.lt.s32.totalorder %v618_v20, 2  ;;  %v642_v38 = vsel %vm640_vm2, %v630_v8, 2102212464  ;;  %v647_v13 = vsel %vm639_vm3, %v630_v8, %v646_v51  ;;  %v484_v11 = vsel %vm401_vm14, %v483_v19, %v482_v45  ;;  %v69_v51 = vpop.permute.xlu0 %68 }
  0xdd   :  { %v1154_v15 = vmin.u32 %v259_v46, %v1718_v42  ;;  %v648_v16 = vsel %vm638_vm4, %v645_v40, %v647_v13  ;;  %v649_v24 = vsel %vm637_vm1, %v627_v7, %v630_v8  ;;  %v641_v29 = vsel %vm637_vm1, %v621_v10, %v624_v43 }
  0xde   :  { %v650_v33 = vsel %vm640_vm2, %v636_v44, 1326507024  ;;  %v1738_v28 = vmul.u32.u64.low %v1692_v36, %v648_v16  ;;  %v1739_v25 = vmul.u32.u64.high %v1692_v36, %v648_v16, %v1738_v28  ;;  %v643_v0 = vsel %vm639_vm3, %v627_v7, %v642_v38 }
  0xdf   :  { %v261_v30 = vclz %v1154_v15  ;;  %v651_v52 = vsel %vm639_vm3, %v633_v31, %v650_v33  ;;  %v506_v48 = vshrl.u32 %v505_v9, 23  ;;  %v1747_v57 = vsel %vm1709_vm15, %v1467_v27, %v484_v11 }
  0xe0   :  { %v652_v45 = vsel %vm638_vm4, %v649_v24, %v651_v52  ;;  %v509_v59 = vand.u32 8388607, %v2179_v61  ;;  %v2177_v3 = vand.u32 2147483647, %v1695_v23  ;;  %1305 = vsinq.f32 %v1677_v26 }
  0xe1   :  { %v1155_v4 = vadd.s32 4294967294, %v261_v30  ;;  %v1754_v43 = vmul.u32.u64.low %v1692_v36, %v652_v45  ;;  %v1755_v8 = vmul.u32.u64.high %v1692_v36, %v652_v45, %v1754_v43  ;;  %v1165_v7 = vadd.s32 4294967169, %v506_v48 }
  0xe2   :  { %v1763_v50 = vsel %vm92_vm0, %v174_v22, %v1679_v5  ;;  %v644_v19 = vsel %vm638_vm4, %v641_v29, %v643_v0  ;;  %v814_v31 = vand.u32 2139095040, %v1695_v23  ;;  %v249_v44 = vadd.s32 %v1655_v55, %v1664_v63 }
  0xe3   :  { %vm1156_vm6 = vcmp.lt.s32.totalorder %v1155_v4, 0  ;;  %v663_v40 = vadd.s32 1, %v1739_v25  ;;  %v512_v46 = vadd.s32 1, %v1165_v7  ;;  %1307 = vcosq.f32 %v1747_v57 }
  0xe4   :  { %v264_v26 = vsel %vm1156_vm6, 0, %v1155_v4  ;;  %v510_v9 = vor.u32 8388608, %v509_v59  ;;  %v815_v10 = vshrl.u32 %v814_v31, 23  ;;  %v660_v22 = vmul.u32 %v1692_v36, %v644_v19 }
  0xe5   :  { %v265_v38 = vsub.s32 32, %v264_v26  ;;  %v269_v5 = vsub.s32 4294967266, %v264_v26  ;;  %v1774_v20 = vand.u32 8388607, %v2177_v3  ;;  %vm662_vm7 = vc.u32 %v1755_v8, %v1738_v28 }
  0xe6   :  { %vm513_vm8 = vcmp.gt.s32.totalorder %v512_v46, 0  ;;  %v1177_v55 = vadd.s32 4294967169, %v815_v10  ;;  %v1779_v63 = vmul.f32 %v1452_v14, %v69_v51  ;;  %v664_v15 = vsel %vm662_vm7, %v663_v40, %v1739_v25 }
  0xe7   :  { %v267_v13 = vshrl.u32 %v249_v44, %v265_v38  ;;  %v270_v11 = vadd.s32 127, %v269_v5  ;;  %v514_v16 = vsel %vm513_vm8, %v512_v46, 0  ;;  %v266_v24 = vshll.u32 %v1718_v42, %v264_v26 }
  0xe8   :  { %v665_v36 = vadd.s32 %v664_v15, %v660_v22  ;;  %v516_v29 = vand.u32 31, %v514_v16  ;;  %v1783_v33 = vshll.u32 %v510_v9, 8  ;;  %v515_v0 = vshrl.u32 %v514_v16, 5 }
  0xe9   :  { %v271_v30 = vshll.u32 %v270_v11, 23  ;;  %v819_v52 = vor.u32 8388608, %v1774_v20  ;;  %v176_v48 = vsub.s32 4, %v1593_v12  ;;  %v268_v45 = vor.u32 %v267_v13, %v266_v24 }
  0xea   :  { %v666_v14 = vadd.s32 536870912, %v665_v36  ;;  %v517_v59 = vsub.s32 32, %v516_v29  ;;  %v821_v4 = vadd.s32 1, %v1177_v55  ;;  %v519_v25 = vshll.u32 %v1360_v54, %v516_v29  ;;  %v1790_v19 = vpop.eup %1305 }
  0xeb   :  { %v272_v43 = vor.u32 4788187, %v271_v30  ;;  %v522_v7 = vshll.u32 %v1361_v56, %v516_v29  ;;  %v708_v42 = vand.u32 2147483647, %v1779_v63  ;;  %v525_v46 = vshll.u32 %v1362_v58, %v516_v29 }
  0xec   :  { %v1792_v31 = vshrl.u32 %v666_v14, 30  ;;  %v520_v44 = vshrl.u32 %v1361_v56, %v517_v59  ;;  %v523_v40 = vshrl.u32 %v1362_v58, %v517_v59  ;;  %v526_v51 = vshrl.u32 %v1363_v60, %v517_v59 }
  0xed   :  { %v528_v26 = vshll.u32 %v1363_v60, %v516_v29  ;;  %v529_v9 = vshrl.u32 %v1364_v62, %v517_v59  ;;  %v531_v10 = vshll.u32 %v1364_v62, %v516_v29  ;;  %v1801_v38 = vpop.eup %1307  ;;  %v532_v13 = vshrl.u32 %v1365_v6, %v517_v59 }
  0xee   :  { %v668_v5 = vshll.u32 %v1792_v31, 30  ;;  %v521_v22 = vor.u32 %v520_v44, %v519_v25  ;;  %v524_v55 = vor.u32 %v523_v40, %v522_v7  ;;  %vm1807_vm9 = vcmp.le.f32.partialorder %v90_v21, 0.7853982 }
  0xef   :  { %v275_v15 = vcvt.s32.f32 %v268_v45  ;;  %v518_v16 = vshrl.u32 %v1360_v54, %v517_v59  ;;  %v527_v24 = vor.u32 %v526_v51, %v525_v46  ;;  %v530_v30 = vor.u32 %v529_v9, %v528_v26 }
  0xf0   :  { %v273_v29 = vand.u32 2147483647, %v272_v43  ;;  %v1812_v14 = vsub.s32 %v665_v36, %v668_v5  ;;  %v533_v3 = vor.u32 %v532_v13, %v531_v10  ;;  %vm534_vm10 = vcmp.lt.s32.totalorder %v515_v0, 1 }
  0xf1   :  { %vm536_vm12 = vcmp.lt.s32.totalorder %v515_v0, 3  ;;  %vm537_vm13 = vcmp.lt.s32.totalorder %v515_v0, 4  ;;  %v538_v25 = vsel %vm534_vm10, %v518_v16, %v521_v22  ;;  %v542_v7 = vsel %vm534_vm10, %v521_v22, %v524_v55 }
  0xf2   :  { %v671_v44 = vsub.s32 0, %v1812_v14  ;;  %v539_v21 = vsel %vm537_vm13, %v527_v24, 2102212464  ;;  %v543_v40 = vsel %vm537_vm13, %v530_v30, 920167782  ;;  %v546_v41 = vsel %vm534_vm10, %v524_v55, %v527_v24 }
  0xf3   :  { %vm535_vm1 = vcmp.lt.s32.totalorder %v515_v0, 2  ;;  %v540_v45 = vsel %vm536_vm12, %v524_v55, %v539_v21  ;;  %v544_v61 = vsel %vm536_vm12, %v527_v24, %v543_v40  ;;  %v547_v59 = vsel %vm537_vm13, %v533_v3, 1326507024 }
  0xf4   :  { %v1815_v46 = vmul.f32 %v275_v15, %v273_v29  ;;  %v1170_v36 = vmin.u32 %v671_v44, %v1812_v14  ;;  %v545_v43 = vsel %vm535_vm1, %v542_v7, %v544_v61  ;;  %v548_v51 = vsel %vm536_vm12, %v530_v30, %v547_v59 }
  0xf5   :  { %v541_v26 = vsel %vm535_vm1, %v538_v25, %v540_v45  ;;  %v549_v9 = vsel %vm535_vm1, %v546_v41, %v548_v51  ;;  %v1819_v10 = vmul.u32.u64.low %v1783_v33, %v545_v43  ;;  %v1820_v5 = vmul.u32.u64.high %v1783_v33, %v545_v43, %v1819_v10 }
  0xf6   :  { %v673_v22 = vclz %v1170_v36  ;;  %v1824_v13 = vmul.u32.u64.low %v1783_v33, %v549_v9  ;;  %v1825_v0 = vmul.u32.u64.high %v1783_v33, %v549_v9, %v1824_v13  ;;  %vm822_vm2 = vcmp.gt.s32.totalorder %v821_v4, 0 }
  0xf7   :  { %v661_v3 = vadd.s32 %v1738_v28, %v1755_v8  ;;  %v823_v55 = vsel %vm822_vm2, %v821_v4, 0  ;;  %v711_v61 = vand.u32 2139095040, %v1779_v63  ;;  %v1834_v41 = vsel %vm1807_vm9, %v1458_v18, %v1763_v50 }
  0xf8   :  { %v277_v15 = vxor.u32 2147483648, %v1815_v46  ;;  %v1171_v16 = vadd.s32 4294967294, %v673_v22  ;;  %v825_v24 = vand.u32 31, %v823_v55  ;;  %v1839_v30 = vshll.u32 %v819_v52, 8 }
  0xf9   :  { %v557_v29 = vmul.u32 %v1783_v33, %v541_v26  ;;  %v560_v28 = vadd.s32 1, %v1820_v5  ;;  %v1843_v8 = vshrl.u32 %v823_v55, 5  ;;  %v1847_v4 = vand.u32 8388607, %v708_v42 }
  0xfa   :  { %vm1172_vm3 = vcmp.lt.s32.totalorder %v1171_v16, 0  ;;  %vm559_vm4 = vc.u32 %v1825_v0, %v1819_v10  ;;  %v826_v50 = vsub.s32 32, %v825_v24  ;;  %v1856_v20 = vsel %vm92_vm0, %v176_v48, %v1593_v12 }
  0xfb   :  { %v676_v33 = vsel %vm1172_vm3, 0, %v1171_v16  ;;  %v561_v52 = vsel %vm559_vm4, %v560_v28, %v1820_v5  ;;  %v828_v25 = vshll.u32 %v1360_v54, %v825_v24  ;;  %v712_v7 = vshrl.u32 %v711_v61, 23 }
  0xfc   :  { %v677_v44 = vsub.s32 32, %v676_v33  ;;  %v681_v21 = vsub.s32 4294967266, %v676_v33  ;;  %v562_v40 = vadd.s32 %v561_v52, %v557_v29  ;;  %v831_v45 = vshll.u32 %v1361_v56, %v825_v24 }
  0xfd   :  { %v678_v59 = vshll.u32 %v1812_v14, %v676_v33  ;;  %v829_v36 = vshrl.u32 %v1361_v56, %v826_v50  ;;  %v832_v43 = vshrl.u32 %v1362_v58, %v826_v50  ;;  %v834_v12 = vshll.u32 %v1362_v58, %v825_v24 }
  0xfe   :  { %v679_v48 = vshrl.u32 %v661_v3, %v677_v44  ;;  %v682_v51 = vadd.s32 127, %v681_v21  ;;  %v563_v26 = vadd.s32 536870912, %v562_v40  ;;  %v835_v9 = vshrl.u32 %v1363_v60, %v826_v50 }
  0xff   :  { %v830_v5 = vor.u32 %v829_v36, %v828_v25  ;;  %v833_v22 = vor.u32 %v832_v43, %v831_v45  ;;  %v837_v13 = vshll.u32 %v1363_v60, %v825_v24  ;;  %v838_v55 = vshrl.u32 %v1364_v62, %v826_v50 }
 0x100   :  { %v680_v61 = vor.u32 %v679_v48, %v678_v59  ;;  %v683_v16 = vshll.u32 %v682_v51, 23  ;;  %v1868_v14 = vshrl.u32 %v563_v26, 30  ;;  %v836_v29 = vor.u32 %v835_v9, %v834_v12 }
 0x101   :  { %vm607_vm0 = vcmp.lt.s32.totalorder %v1571_v39, 0  ;;  %v827_v28 = vshrl.u32 %v1360_v54, %v826_v50  ;;  %v839_v3 = vor.u32 %v838_v55, %v837_v13  ;;  %v840_v33 = vshll.u32 %v1364_v62, %v825_v24 }
 0x102   :  { %v841_v52 = vshrl.u32 %v1365_v6, %v826_v50  ;;  %vm195_vm6 = vcmp.lt.s32.totalorder %v1473_v32, 0  ;;  %vm1877_vm7 = vcmp.le.f32.partialorder %v605_v53, 0.7853982  ;;  %v684_v44 = vor.u32 4788187, %v683_v16 }
 0x103   :  { %v687_v21 = vcvt.s32.f32 %v680_v61  ;;  %v565_v45 = vshll.u32 %v1868_v14, 30  ;;  %vm843_vm8 = vcmp.lt.s32.totalorder %v1843_v8, 1  ;;  %vm845_vm10 = vcmp.lt.s32.totalorder %v1843_v8, 3 }
 0x104   :  { %v842_v59 = vor.u32 %v841_v52, %v840_v33  ;;  %vm846_vm12 = vcmp.lt.s32.totalorder %v1843_v8, 4  ;;  %v847_v24 = vsel %vm843_vm8, %v827_v28, %v830_v5  ;;  %v685_v50 = vand.u32 2147483647, %v684_v44 }
 0x105   :  { %v1885_v36 = vsub.s32 %v562_v40, %v565_v45  ;;  %v848_v43 = vsel %vm846_vm12, %v836_v29, 2102212464  ;;  %v851_v53 = vsel %vm843_vm8, %v830_v5, %v833_v22  ;;  %v852_v48 = vsel %vm846_vm12, %v839_v3, 920167782 }
 0x106   :  { %v849_v12 = vsel %vm845_vm10, %v833_v22, %v848_v43  ;;  %v855_v51 = vsel %vm843_vm8, %v833_v22, %v836_v29  ;;  %v856_v26 = vsel %vm846_vm12, %v842_v59, 1326507024  ;;  %v688_v9 = vmul.f32 %v687_v21, %v685_v50 }
 0x107   :  { %v568_v13 = vsub.s32 0, %v1885_v36  ;;  %vm844_vm13 = vcmp.lt.s32.totalorder %v1843_v8, 2  ;;  %v853_v55 = vsel %vm845_vm10, %v836_v29, %v852_v48  ;;  %v857_v40 = vsel %vm845_vm10, %v839_v3, %v856_v26 }
 0x108   :  { %v854_v61 = vsel %vm844_vm13, %v851_v53, %v853_v55  ;;  %v1173_v16 = vadd.s32 4294967169, %v712_v7  ;;  %v716_v5 = vor.u32 8388608, %v1847_v4  ;;  %v689_v28 = vxor.u32 2147483648, %v688_v9 }
 0x109   :  { %v1166_v33 = vmin.u32 %v568_v13, %v1885_v36  ;;  %v850_v22 = vsel %vm844_vm13, %v847_v24, %v849_v12  ;;  %v858_v52 = vsel %vm844_vm13, %v855_v51, %v857_v40  ;;  %1309 = vsinq.f32 %v1747_v57 }
 0x10a   :  { %v1898_v44 = vmul.u32.u64.low %v1839_v30, %v858_v52  ;;  %v1899_v21 = vmul.u32.u64.high %v1839_v30, %v858_v52, %v1898_v44  ;;  %v1902_v45 = vmul.u32.u64.low %v1839_v30, %v854_v61  ;;  %v1903_v59 = vmul.u32.u64.high %v1839_v30, %v854_v61, %v1902_v45 }
 0x10b   :  { %v690_v8 = vsel %vm607_vm0, %v689_v28, %v688_v9  ;;  %v570_v4 = vclz %v1166_v33  ;;  %v718_v7 = vadd.s32 1, %v1173_v16  ;;  %v1914_v29 = vsel %vm195_vm6, %v277_v15, %v1815_v46 }
 0x10c   :  { %v1919_v3 = vsel %vm1877_vm7, %v1571_v39, %v690_v8  ;;  %v558_v57 = vadd.s32 %v1819_v10, %v1825_v0  ;;  %v179_v24 = vsel %vm1807_vm9, 0, %v1856_v20  ;;  %v866_v43 = vmul.u32 %v1839_v30, %v850_v22 }
 0x10d   :  { %v1167_v50 = vadd.s32 4294967294, %v570_v4  ;;  %vm719_vm1 = vcmp.gt.s32.totalorder %v718_v7, 0  ;;  %1311 = vcosq.f32 %v1834_v41  ;;  %vm868_vm2 = vc.u32 %v1899_v21, %v1902_v45 }
 0x10e   :  { %v869_v46 = vadd.s32 1, %v1903_v59  ;;  %v1931_v15 = vshll.u32 %v716_v5, 8  ;;  %1313 = vsinq.f32 %v1834_v41  ;;  %v720_v11 = vsel %vm719_vm1, %v718_v7, 0 }
 0x10f   :  { %1315 = vcosq.f32 %v1919_v3  ;;  %vm1168_vm3 = vcmp.lt.s32.totalorder %v1167_v50, 0  ;;  %v1935_v10 = vand.u32 3, %v179_v24  ;;  %v721_v20 = vshrl.u32 %v720_v11, 5 }
 0x110   :  { %v573_v0 = vsel %vm1168_vm3, 0, %v1167_v50  ;;  %v870_v30 = vsel %vm868_vm2, %v869_v46, %v1903_v59  ;;  %v722_v53 = vand.u32 31, %v720_v11  ;;  %vm504_vm9 = vcmp.lt.s32.totalorder %v1690_v2, 0 }
 0x111   :  { %v574_v12 = vsub.s32 32, %v573_v0  ;;  %v575_v48 = vshll.u32 %v1885_v36, %v573_v0  ;;  %v578_v51 = vsub.s32 4294967266, %v573_v0  ;;  %v871_v26 = vadd.s32 %v870_v30, %v866_v43 }
 0x112   :  { %v723_v9 = vsub.s32 32, %v722_v53  ;;  %v725_v13 = vshll.u32 %v1360_v54, %v722_v53  ;;  %v728_v41 = vshll.u32 %v1361_v56, %v722_v53  ;;  %v731_v55 = vshll.u32 %v1362_v58, %v722_v53 }
 0x113   :  { %v576_v61 = vshrl.u32 %v558_v57, %v574_v12  ;;  %v579_v40 = vadd.s32 127, %v578_v51  ;;  %v872_v16 = vadd.s32 536870912, %v871_v26  ;;  %v734_v5 = vshll.u32 %v1363_v60, %v722_v53  ;;  %v1947_v52 = vpop.eup %1309 }
 0x114   :  { %v724_v28 = vshrl.u32 %v1360_v54, %v723_v9  ;;  %v726_v33 = vshrl.u32 %v1361_v56, %v723_v9  ;;  %v729_v36 = vshrl.u32 %v1362_v58, %v723_v9  ;;  %v732_v22 = vshrl.u32 %v1363_v60, %v723_v9 }
 0x115   :  { %v577_v44 = vor.u32 %v576_v61, %v575_v48  ;;  %v580_v59 = vshll.u32 %v579_v40, 23  ;;  %v1949_v8 = vshrl.u32 %v872_v16, 30  ;;  %v735_v4 = vshrl.u32 %v1364_v62, %v723_v9 }
 0x116   :  { %v727_v7 = vor.u32 %v726_v33, %v725_v13  ;;  %v730_v57 = vor.u32 %v729_v36, %v728_v41  ;;  %v733_v24 = vor.u32 %v732_v22, %v731_v55  ;;  %v737_v54 = vshll.u32 %v1364_v62, %v722_v53 }
 0x117   :  { %v1954_v56 = vpop.eup %1311  ;;  %v2188_v58 = vand.u32 2147483647, %v1690_v2  ;;  %v581_v50 = vor.u32 4788187, %v580_v59  ;;  %v584_v43 = vcvt.s32.f32 %v577_v44  ;;  %v874_v46 = vshll.u32 %v1949_v8, 30 }
 0x118   :  { %v736_v11 = vor.u32 %v735_v4, %v734_v5  ;;  %v1314_v0 = vpop.eup %1313  ;;  %v738_v30 = vshrl.u32 %v1365_v6, %v723_v9  ;;  %vm740_vm8 = vcmp.lt.s32.totalorder %v721_v20, 1  ;;  %vm741_vm10 = vcmp.lt.s32.totalorder %v721_v20, 2 }
 0x119   :  { %vm1958_vm4 = vcmp.le.f32.partialorder %v2188_v58, 0.7853982  ;;  %vm742_vm12 = vcmp.lt.s32.totalorder %v721_v20, 3  ;;  %v1964_v62 = vpop.eup %1315  ;;  %v582_v53 = vand.u32 2147483647, %v581_v50  ;;  %v1966_v12 = vsub.s32 %v871_v26, %v874_v46 }
 0x11a   :  { %vm743_vm13 = vcmp.lt.s32.totalorder %v721_v20, 4  ;;  %v744_v48 = vsel %vm740_vm8, %v724_v28, %v727_v7  ;;  %v739_v51 = vor.u32 %v738_v30, %v737_v54  ;;  %v748_v41 = vsel %vm740_vm8, %v727_v7, %v730_v57 }
 0x11b   :  { %v745_v13 = vsel %vm743_vm13, %v733_v24, 2102212464  ;;  %v749_v55 = vsel %vm743_vm13, %v736_v11, 920167782  ;;  %v585_v61 = vmul.f32 %v584_v43, %v582_v53  ;;  %v877_v40 = vsub.s32 0, %v1966_v12 }
 0x11c   :  { %v746_v6 = vsel %vm742_vm12, %v730_v57, %v745_v13  ;;  %v750_v9 = vsel %vm742_vm12, %v733_v24, %v749_v55  ;;  %v752_v26 = vsel %vm740_vm8, %v730_v57, %v733_v24  ;;  %v753_v5 = vsel %vm743_vm13, %v739_v51, 1326507024 }
 0x11d   :  { %v751_v16 = vsel %vm741_vm10, %v748_v41, %v750_v9  ;;  %v279_v33 = vsub.s32 4, %v1699_v34  ;;  %v586_v28 = vxor.u32 2147483648, %v585_v61  ;;  %v1178_v36 = vmin.u32 %v877_v40, %v1966_v12 }
 0x11e   :  { %v747_v22 = vsel %vm741_vm10, %v744_v48, %v746_v6  ;;  %v754_v44 = vsel %vm742_vm12, %v736_v11, %v753_v5  ;;  %v1981_v4 = vmul.u32.u64.low %v1931_v15, %v751_v16  ;;  %v1982_v7 = vmul.u32.u64.high %v1931_v15, %v751_v16, %v1981_v4 }
 0x11f   :  { %v755_v59 = vsel %vm741_vm10, %v752_v26, %v754_v44  ;;  %v186_v54 = vxor.u32 2147483648, %v1314_v0  ;;  %v587_v57 = vsel %vm504_vm9, %v586_v28, %v585_v61  ;;  %v879_v24 = vclz %v1178_v36 }
 0x120   :  { %v1987_v58 = vmul.u32.u64.low %v1931_v15, %v755_v59  ;;  %v1988_v50 = vmul.u32.u64.high %v1931_v15, %v755_v59, %v1987_v58  ;;  %1317 = vsinq.f32 %v1919_v3  ;;  %v590_v20 = vsel %vm1958_vm4, %v1690_v2, %v587_v57 }
 0x121   :  { %vm185_vm1 = vcmp.eq.s32.totalorder %v1935_v10, 0  ;;  %v2191_v43 = vand.u32 2147483647, %v1473_v32  ;;  %v1179_v11 = vadd.s32 4294967294, %v879_v24  ;;  %v189_v30 = vxor.u32 2147483648, %v1954_v56 }
 0x122   :  { %v280_v53 = vsel %vm195_vm6, %v279_v33, %v1699_v34  ;;  %v867_v48 = vadd.s32 %v1902_v45, %v1899_v21  ;;  %v763_v51 = vmul.u32 %v1931_v15, %v747_v22  ;;  %v766_v13 = vadd.s32 1, %v1982_v7 }
 0x123   :  { %vm1997_vm2 = vcmp.le.f32.partialorder %v2191_v43, 0.7853982  ;;  %vm182_vm3 = vweird.f32 %v1458_v18  ;;  %v187_v41 = vsel %vm185_vm1, %v1954_v56, %v186_v54  ;;  %1319 = vcosq.f32 %v590_v20 }
 0x124   :  { %v281_v3 = vsel %vm1997_vm2, %v1473_v32, %v1914_v29  ;;  %vm1180_vm8 = vcmp.lt.s32.totalorder %v1179_v11, 0  ;;  %vm765_vm6 = vc.u32 %v1988_v50, %v1981_v4  ;;  %vm188_vm10 = vcmp.eq.s32.totalorder %v1935_v10, 2 }
 0x125   :  { %v882_v34 = vsel %vm1180_vm8, 0, %v1179_v11  ;;  %v767_v29 = vsel %vm765_vm6, %v766_v13, %v1982_v7  ;;  %v282_v21 = vsel %vm1997_vm2, 0, %v280_v53  ;;  %1321 = vcosq.f32 %v281_v3 }
 0x126   :  { %v883_v45 = vsub.s32 32, %v882_v34  ;;  %v887_v15 = vsub.s32 4294967266, %v882_v34  ;;  %v768_v55 = vadd.s32 %v767_v29, %v763_v51  ;;  %v190_v61 = vsel %vm188_vm10, %v189_v30, %v1314_v0 }
 0x127   :  { %v884_v40 = vshll.u32 %v1966_v12, %v882_v34  ;;  %vm184_vm12 = vcmp.lt.s32.totalorder %v1935_v10, 2  ;;  %1323 = vsinq.f32 %v281_v3  ;;  %v382_v56 = vsub.s32 4, %v1559_v35 }
 0x128   :  { %v885_v6 = vshrl.u32 %v867_v48, %v883_v45  ;;  %v888_v9 = vadd.s32 127, %v887_v15  ;;  %v769_v16 = vadd.s32 536870912, %v768_v55  ;;  %v286_v26 = vand.u32 3, %v282_v21 }
 0x129   :  { %1325 = vsinq.f32 %v590_v20  ;;  %v2024_v5 = vadd.s32 %v1981_v4, %v1988_v50  ;;  %v191_v33 = vsel %vm184_vm12, %v187_v41, %v190_v61  ;;  %v383_v0 = vsel %vm298_vm5, %v382_v56, %v1559_v35 }
 0x12a   :  { %v886_v28 = vor.u32 %v885_v6, %v884_v40  ;;  %v889_v12 = vshll.u32 %v888_v9, 23  ;;  %v2029_v36 = vshrl.u32 %v769_v16, 30  ;;  %v385_v10 = vsel %vm1668_vm11, 0, %v383_v0  ;;  %v2033_v22 = vpop.eup %1317 }
 0x12b   :  { %v389_v44 = vand.u32 3, %v385_v10  ;;  %v392_v59 = vxor.u32 2147483648, %v1790_v19  ;;  %v395_v4 = vxor.u32 2147483648, %v1725_v37  ;;  %v485_v7 = vsub.s32 4, %v1627_v49 }
 0x12c   :  { %vm813_vm13 = vcmp.lt.s32.totalorder %v1695_v23, 0  ;;  %v890_v54 = vor.u32 4788187, %v889_v12  ;;  %v771_v35 = vshll.u32 %v2029_v36, 30  ;;  %v192_v57 = vsel %vm182_vm3, nan, %v191_v33 }
 0x12d   :  { %vm287_vm5 = vcmp.lt.s32.totalorder %v286_v26, 2  ;;  %v893_v1 = vcvt.s32.f32 %v886_v28  ;;  %vm285_vm11 = vweird.f32 %v1473_v32  ;;  %vm288_vm1 = vcmp.eq.s32.totalorder %v286_v26, 0  ;;  %v2046_v58 = vpop.eup %1319 }
 0x12e   :  { %vm291_vm2 = vcmp.eq.s32.totalorder %v286_v26, 2  ;;  %v486_v24 = vsel %vm401_vm14, %v485_v7, %v1627_v49  ;;  %v891_v50 = vand.u32 2147483647, %v890_v54  ;;  %v2048_v20 = vsub.s32 %v768_v55, %v771_v35 }
 0x12f   :  { %vm388_vm8 = vweird.f32 %v1455_v17  ;;  %vm391_vm6 = vcmp.eq.s32.totalorder %v389_v44, 0  ;;  %vm394_vm10 = vcmp.eq.s32.totalorder %v389_v44, 2  ;;  %v1322_v18 = vpop.eup %1321  ;;  %v2194_v43 = vand.u32 2147483647, %v1695_v23 }
 0x130   :  { %v393_v11 = vsel %vm391_vm6, %v1725_v37, %v392_v59  ;;  %v396_v49 = vsel %vm394_vm10, %v395_v4, %v1790_v19  ;;  %v488_v30 = vsel %vm1709_vm15, 0, %v486_v24  ;;  %vm491_vm14 = vweird.f32 %v1467_v27 }
 0x131   :  { %vm2053_vm3 = vcmp.le.f32.partialorder %v2194_v43, 0.7853982  ;;  %v894_v53 = vmul.f32 %v893_v1, %v891_v50  ;;  %v774_v3 = vsub.s32 0, %v2048_v20  ;;  %v292_v48 = vxor.u32 2147483648, %v1322_v18  ;;  %v1324_v13 = vpop.eup %1323 }
 0x132   :  { %v495_v51 = vxor.u32 2147483648, %v1947_v52  ;;  %vm390_vm12 = vcmp.lt.s32.totalorder %v389_v44, 2  ;;  %v492_v41 = vand.u32 3, %v488_v30  ;;  %v498_v34 = vxor.u32 2147483648, %v1801_v38 }
 0x133   :  { %v588_v37 = vsub.s32 4, %v1868_v14  ;;  %v895_v29 = vxor.u32 2147483648, %v894_v53  ;;  %v1174_v19 = vmin.u32 %v774_v3, %v2048_v20  ;;  %v289_v47 = vxor.u32 2147483648, %v1324_v13  ;;  %v1326_v45 = vpop.eup %1325 }
 0x134   :  { %v293_v21 = vsel %vm291_vm2, %v292_v48, %v1324_v13  ;;  %v397_v15 = vsel %vm390_vm12, %v393_v11, %v396_v49  ;;  %vm493_vm15 = vcmp.lt.s32.totalorder %v492_v41, 2  ;;  %vm494_vm6 = vcmp.eq.s32.totalorder %v492_v41, 0 }
 0x135   :  { %v589_v55 = vsel %vm504_vm9, %v588_v37, %v1868_v14  ;;  %v776_v61 = vclz %v1174_v19  ;;  %v290_v40 = vsel %vm288_vm1, %v1322_v18, %v289_v47  ;;  %v496_v56 = vsel %vm494_vm6, %v1801_v38, %v495_v51 }
 0x136   :  { %vm497_vm10 = vcmp.eq.s32.totalorder %v492_v41, 2  ;;  %v896_v6 = vsel %vm813_vm13, %v895_v29, %v894_v53  ;;  %v294_v9 = vsel %vm287_vm5, %v290_v40, %v293_v21  ;;  %v591_v33 = vsel %vm1958_vm4, 0, %v589_v55  ;;  %v914_v41 = vld [vmem:[%s2171_s2] sm:$0xff] }
 0x137   :  { %v499_v16 = vsel %vm497_vm10, %v498_v34, %v1947_v52  ;;  %v1175_v0 = vadd.s32 4294967294, %v776_v61  ;;  %v295_v14 = vsel %vm285_vm11, nan, %v294_v9  ;;  %v598_v12 = vxor.u32 2147483648, %v1326_v45 }
 0x138   :  { %v500_v28 = vsel %vm493_vm15, %v496_v56, %v499_v16  ;;  %v1236_v10 = vpack.c.bf16 %v295_v14, %v192_v57  ;;  %v398_v38 = vsel %vm388_vm8, nan, %v397_v15  ;;  %v595_v26 = vand.u32 3, %v591_v33 }
 0x139   :  { %v501_v44 = vsel %vm491_vm14, nan, %v500_v28  ;;  %v899_v52 = vsel %vm2053_vm3, %v1695_v23, %v896_v6  ;;  %vm1176_vm9 = vcmp.lt.s32.totalorder %v1175_v0, 0  ;;  %v601_v60 = vxor.u32 2147483648, %v2046_v58 }
 0x13a   :  { %v691_v32 = vsub.s32 4, %v1792_v31  ;;  %v779_v59 = vsel %vm1176_vm9, 0, %v1175_v0  ;;  %1237 = vmatprep.subr.bf16.mxu0 %v1236_v10  ;;  %v1240_v4 = vpack.c.bf16 %v501_v44, %v398_v38  ;;  %vm596_vm4 = vcmp.lt.s32.totalorder %v595_v26, 2  ;;  %v915_v44 = vld [vmem:[%s2171_s2 + $0x8] sm:$0xff] }
 0x13b   :  { %vm597_vm5 = vcmp.eq.s32.totalorder %v595_v26, 0  ;;  %v780_v17 = vsub.s32 32, %v779_v59  ;;  %v784_v7 = vsub.s32 4294967266, %v779_v59  ;;  %1239 = vmatpush3.bf16.msra.mxu0 %v1236_v10  ;;  %vm600_vm11 = vcmp.eq.s32.totalorder %v595_v26, 2  ;;  %v916_v26 = vld [vmem:[%s2171_s2 + $0x10] sm:$0xff] }
 0x13c   :  { %v599_v27 = vsel %vm597_vm5, %v2046_v58, %v598_v12  ;;  %v781_v54 = vshll.u32 %v2048_v20, %v779_v59  ;;  %1241 = vmatprep.subr.bf16.mxu0 %v1240_v4  ;;  %v602_v35 = vsel %vm600_vm11, %v601_v60, %v1326_v45  ;;  %v692_v57 = vsel %vm607_vm0, %v691_v32, %v1792_v31  ;;  %v930_v60 = vpop.permute.xlu1 %929  ;;  %v925_v32 = vpop.permute.xlu0 %924 }
 0x13d   :  { %v701_v1 = vxor.u32 2147483648, %v2033_v22  ;;  %v782_v24 = vshrl.u32 %v2024_v5, %v780_v17  ;;  %v785_v50 = vadd.s32 127, %v784_v7  ;;  %v603_v18 = vsel %vm596_vm4, %v599_v27, %v602_v35  ;;  %v1045_v7 = vld [vmem:[%s2173_s4 + $0x8] sm:$0xff]  ;;  %v1044_v35 = vld [vmem:[%s2173_s4] sm:$0xff] }
 0x13e   :  { %v694_v43 = vsel %vm1877_vm7, 0, %v692_v57  ;;  %v704_v58 = vxor.u32 2147483648, %v1964_v62  ;;  %vm594_vm1 = vweird.f32 %v1690_v2  ;;  %1327 = vcosq.f32 %v899_v52 }
 0x13f   :  { %v698_v11 = vand.u32 3, %v694_v43  ;;  %v783_v49 = vor.u32 %v782_v24, %v781_v54  ;;  %v786_v20 = vshll.u32 %v785_v50, 23  ;;  %1243 = vmatpush3.bf16.msra.mxu0 %v1240_v4  ;;  %v604_v30 = vsel %vm594_vm1, nan, %v603_v18 }
 0x140   :  { %1329 = vsinq.f32 %v899_v52  ;;  %vm697_vm7 = vweird.f32 %v1571_v39  ;;  %v897_v2 = vsub.s32 4, %v1949_v8  ;;  %vm942_vm14 = vcmask 523264   ;;  %v940_v57 = vpop.permute.xlu1 %939  ;;  %v935_v50 = vpop.permute.xlu0 %934 }
 0x141   :  { %vm700_vm0 = vcmp.eq.s32.totalorder %v698_v11, 0  ;;  %vm703_vm2 = vcmp.eq.s32.totalorder %v698_v11, 2  ;;  %v787_v31 = vor.u32 4788187, %v786_v20  ;;  %vm699_vm8 = vcmp.lt.s32.totalorder %v698_v11, 2  ;;  %1219 = vmatprep.mubr.msk.f32.mxu0 %vm942_vm14, %v914_v41 }
 0x142   :  { %v702_v5 = vsel %vm700_vm0, %v1964_v62, %v701_v1  ;;  %v705_v53 = vsel %vm703_vm2, %v704_v58, %v2033_v22  ;;  %v790_v48 = vcvt.s32.f32 %v783_v49  ;;  %vm710_vm12 = vcmp.lt.s32.totalorder %v1779_v63, 0  ;;  %v1047_v49 = vld [vmem:[%s2173_s4 + $0x18] sm:$0xff] }
 0x143   :  { %v706_v25 = vsel %vm699_vm8, %v702_v5, %v705_v53  ;;  %v788_v3 = vand.u32 2147483647, %v787_v31  ;;  %v898_v39 = vsel %vm813_vm13, %v897_v2, %v1949_v8  ;;  %vm2115_vm15 = vcmp.le.f32.partialorder %v708_v42, 0.7853982  ;;  %v1046_v31 = vld [vmem:[%s2173_s4 + $0x10] sm:$0xff]  ;;  %s1335_s4 = scalar_lea.vmem %s1141_s20, 128 }
 0x144   :  { %v707_v51 = vsel %vm697_vm7, nan, %v706_v25  ;;  %v794_v29 = vsub.s32 4, %v2029_v36  ;;  %v900_v21 = vsel %vm2053_vm3, 0, %v898_v39  ;;  %vm903_vm4 = vweird.f32 %v1695_v23  ;;  %v917_v23 = vld [vmem:[%s2171_s2 + $0x18] sm:$0xff]  ;;  %p1336_p0 = scmp.ne.s32.totalorder %s1141_s20, %s1335_s4  ;;  %p1341_p2 = scmp.lt.s32.totalorder %s1335_s4, %s1335_s4 }
 0x145   :  { %v1244_v13 = vpack.c.bf16 %v707_v51, %v604_v30  ;;  %v791_v34 = vmul.f32 %v790_v48, %v788_v3  ;;  %v904_v42 = vand.u32 3, %v900_v21  ;;  %vm800_vm11 = vweird.f32 %v1779_v63  ;;  %v1052_v51 = vld [vmem:[%s2174_s5] sm:$0xff] }
 0x146   :  { %v795_v8 = vsel %vm710_vm12, %v794_v29, %v2029_v36  ;;  %vm1367_vm1 = vmmov 0   ;;  %v1368_v52 = vmov 0.0   ;;  %vm1059_vm0 = vcmask 261120   ;;  %p1342_p3 = por %p1341_p2, %p1340_p1 }
 0x147   :  { %1245 = vmatprep.subr.bf16.mxu0 %v1244_v13  ;;  %v792_v62 = vxor.u32 2147483648, %v791_v34  ;;  %v797_v61 = vsel %vm2115_vm15, 0, %v795_v8  ;;  %vm906_vm13 = vcmp.eq.s32.totalorder %v904_v42, 0  ;;  %vm909_vm6 = vcmp.eq.s32.totalorder %v904_v42, 2  ;;  %1233 = vmatprep.mubr.msk.f32.mxu1 %vm1367_vm1, %v1368_v52 }
 0x148   :  { %1247 = vmatpush3.bf16.msra.mxu0 %v1244_v13  ;;  %v1328_v19 = vpop.eup %1327  ;;  %v801_v40 = vand.u32 3, %v797_v61  ;;  %vm905_vm10 = vcmp.lt.s32.totalorder %v904_v42, 2  ;;  %v1057_v13 = vpop.permute.xlu0 %1056  ;;  %p1343_p4 = pnand %p1342_p3, %p1336_p0 }
 0x149   :  { %v793_v37 = vsel %vm710_vm12, %v792_v62, %v791_v34  ;;  %v910_v55 = vxor.u32 2147483648, %v1328_v19 }
 0x14a   :  { %v796_v47 = vsel %vm2115_vm15, %v1779_v63, %v793_v37  ;;  %v1330_v45 = vpop.eup %1329  ;;  %vm806_vm3 = vcmp.eq.s32.totalorder %v801_v40, 2  ;;  %vm803_vm9 = vcmp.eq.s32.totalorder %v801_v40, 0  ;;  %vm802_vm5 = vcmp.lt.s32.totalorder %v801_v40, 2 }
 0x14b   :  { %1331 = vcosq.f32 %v796_v47  ;;  %v907_v15 = vxor.u32 2147483648, %v1330_v45  ;;  %v911_v6 = vsel %vm909_vm6, %v910_v55, %v1330_v45  ;;  %v1366_v63 = vmov 0.0|0.0  }
 0x14c   :  { %1333 = vsinq.f32 %v796_v47  ;;  %1252 = vmatprep.subr.bf16.mxu1 %v1366_v63 }
 0x14d   :  { %v908_v56 = vsel %vm906_vm13, %v1328_v19, %v907_v15 }
 0x14e   :  { %v912_v33 = vsel %vm905_vm10, %v908_v56, %v911_v6 }
 0x14f   :  { %v913_v28 = vsel %vm903_vm4, nan, %v912_v33 }
 0x155   :  { %v1332_v9 = vpop.eup %1331 }
 0x156   :  { %v1334_v16 = vpop.eup %1333  ;;  %v807_v46 = vxor.u32 2147483648, %v1332_v9 }
 0x157   :  { %v804_v0 = vxor.u32 2147483648, %v1334_v16 }
 0x158   :  { %v808_v36 = vsel %vm806_vm3, %v807_v46, %v1334_v16 }
 0x159   :  { %v805_v14 = vsel %vm803_vm9, %v1332_v9, %v804_v0 }
 0x15a   :  { %v809_v12 = vsel %vm802_vm5, %v805_v14, %v808_v36 }
 0x15b   :  { %v810_v10 = vsel %vm800_vm11, nan, %v809_v12 }
 0x15c   :  { %v1248_v38 = vpack.c.bf16 %v913_v28, %v810_v10 }
 0x15e   :  { %1249 = vmatprep.subr.bf16.mxu0 %v1248_v38 }
 0x15f   :  { %1251 = vmatpush3.bf16.msra.mxu0 %v1248_v38 }
 0x162   :  { %1220 = vmatmul.mubr.msk.f32.vlgmr.msra.gmra.mrb[0].mxu0 %vm942_vm14, %v915_v44 }
 0x163   :  { %1222 = vmatprep.mubr.msk.f32.mxu0 %vm942_vm14, %v916_v26 }
 0x166   :  { %1223 = vmatmul.mubr.msk.f32.gmra.mrb[2].mxu0 %vm942_vm14, %v917_v23 }
 0x235   :  { %v1221_v59 = vpop.f32.mrb[0].mxu0 }
 0x236   :  { %v1027_v4 = vadd.f32 %v1221_v59, %v930_v60  ;;  %v1021_v17 = vpop.f32.mrb[1].mxu0 }
 0x237   :  { %v1022_v27 = vadd.f32 %v1021_v17, %v925_v32 }
 0x238   :  { %v1041_v54 = vmax.f32 %v1027_v4, 0.0 }
 0x239   :  { %v1040_v1 = vmax.f32 %v1022_v27, 0.0  ;;  %v1224_v24 = vpop.f32.mrb[2].mxu0 }
 0x23a   :  { %v1049_v18 = vmul.f32 %v1045_v7, %v1041_v54  ;;  %v1037_v43 = vadd.f32 %v1224_v24, %v940_v57  ;;  %v1031_v11 = vpop.f32.mrb[3].mxu0 }
 0x23b   :  { %v1048_v58 = vmul.f32 %v1044_v35, %v1040_v1  ;;  %v1032_v20 = vadd.f32 %v1031_v11, %v935_v50 }
 0x23c   :  { %v1043_v30 = vmax.f32 %v1037_v43, 0.0 }
 0x23d   :  { %v1042_v5 = vmax.f32 %v1032_v20, 0.0  ;;  %v1253_v53 = vpack.c.bf16 %v1049_v18, %v1048_v58 }
 0x23e   :  { %v1051_v25 = vmul.f32 %v1047_v49, %v1043_v30 }
 0x23f   :  { %v1050_v3 = vmul.f32 %v1046_v31, %v1042_v5  ;;  %1254 = vmatpush3.bf16.msra.mxu1 %v1253_v53 }
 0x240   :  { %1255 = vmatprep.subr.bf16.mxu1 %v1366_v63 }
 0x241   :  { %v1256_v48 = vpack.c.bf16 %v1051_v25, %v1050_v3 }
 0x243   :  { %1257 = vmatpush3.bf16.msra.mxu1 %v1256_v48 }
 0x246   :  { %1234 = vmatmul.mubr.msk.f32.vlgmr.msra.gmra.mrb[0].mxu1 %vm1059_vm0, %v1052_v51 }
 0x319   :  { %v1129_v2 = vpop.f32.mrb[0].mxu1 }
 0x31a   :  { %v1130_v41 = vadd.f32 %v1129_v2, %v1057_v13  ;;  %v1235_v34 = vpop.f32.mrb[1].mxu1 }
 0x31c   :  { %1133 = vst [vmem:[#allocation2] sm:$0xff] %v1130_v41 }
 0x31d   :  { %1346 = shalt.err (!%p1343_p4)
}
 0x31e   :  { %s1347_s5 = scalar_lea.hbm %s2176_s7, 128 }
 0x31f   :  { %p1348_p5 = scmp.ne.s32.totalorder %s2176_s7, %s1347_s5  ;;  %p1351_p6 = scmp.lt.u32.totalorder %s1347_s5, %s2176_s7 }
 0x321   :  { %p1353_p7 = pnand %p1351_p6, %p1348_p5 }
 0x323   :  { %1356 = shalt.err (!%p1353_p7)
}
 0x324   :  { %1143 = dma.vmem_to_hbm [thread:$0]  %s1141_s20, 128, %s2176_s7, [#allocation3]  }
 0x325   :  { %1357 = dma.done.wait [#allocation3], 128  }
 0x326   :  { %1358 = vsyncadd [#allocation3], 4294967168 }
 0x327   :  { %1147 = vsyncpa [#allocation3], 1 }

</bundles_post_ra>
